<compile_context>
chip_gen: v7x
topology: tpu7x:2x2x1
jax: 0.10.0
libtpu: 0.0.40
codegen_flags: <defaults>
</compile_context>

<pallas_src>
import functools

import jax
import jax.numpy as jnp
from jax.experimental import pallas as pl
from jax.experimental.pallas import tpu as pltpu

PATCH = 4            # synthetic patch size for the feature-extractor stand-in
TOKEN_TILE = 512     # row tile for token kernels (multiple of 16 rows)
CE_TILE = 1024       # row tile for the cross-entropy reduction
CLASS_PAD = 128      # pad class / cluster axis to a full lane width
NEG = -1e30          # mask value for padded cluster columns

_COMPILER_PARAMS = pltpu.CompilerParams(
    dimension_semantics=("parallel",),       # megacore-shard the row axis (v7x)
    vmem_limit_bytes=32 * 1024 * 1024,       # explicit; tiles sized for v7x 64 MiB
)


def _round_up(x, m):
    return ((x + m - 1) // m) * m


def _tile_rows(n, max_tile, mult=16):
    return min(_round_up(n, mult), max_tile)


def _pad_rows(x, n_pad, value=0):
    n = x.shape[0]
    if n_pad == n:
        return x
    return jnp.pad(x, ((0, n_pad - n), (0, 0)), constant_values=value)


def _write_tile_scalar(ref, s11):
    # Per-tile scalar partial, broadcast over a full (8,128) tile so the store
    # is a single unmasked vst; the host sums partials[:, 0, 0].
    ref[...] = jnp.broadcast_to(jnp.reshape(s11, (1, 1, 1)), (1, 8, 128))


# --------------------------- Pallas kernels ---------------------------------

def embed_mse_kernel(x_ref, a_ref, w_ref, b_ref, code_ref, other_ref, mse_ref):
    # Fused patch-embedding for img and aug_img + MSE partial sum.
    w = w_ref[...]                       # (P, D) bf16, resident across the grid
    b = b_ref[...]                       # (1, D) f32
    code = jnp.dot(x_ref[...], w, preferred_element_type=jnp.float32) + b
    other = jnp.dot(a_ref[...], w, preferred_element_type=jnp.float32) + b
    code_ref[...] = code
    other_ref[...] = other
    d = code - other
    s = jnp.sum(jnp.sum(d * d, axis=1, keepdims=True), axis=0, keepdims=True)
    _write_tile_scalar(mse_ref, s)       # padded rows contribute exactly 0


def probe_kernel(f_ref, wl_ref, bl_ref, ct_ref, logits_ref, inner_ref, closs_ref,
                 *, num_clusters, n_valid, tile_rows):
    # Fused linear probe (1x1 conv) + cluster probe (cosine similarity) over one
    # row tile of features.  feat is read from HBM exactly once.
    f = f_ref[...]                                        # (TM, D) f32
    fb = f.astype(jnp.bfloat16)

    # Linear probe: class axis zero-padded to 128 lanes (lane-dense store).
    logits_ref[...] = (
        jnp.dot(fb, wl_ref[...], preferred_element_type=jnp.float32) + bl_ref[...]
    )

    # Cluster probe: clusters arrive pre-L2-normalized and pre-transposed (D, K).
    fn = f * jax.lax.rsqrt(jnp.sum(f * f, axis=-1, keepdims=True) + 1e-12)
    inner = jnp.dot(fn.astype(jnp.bfloat16), ct_ref[...],
                    preferred_element_type=jnp.float32)   # (TM, 128)
    col = jax.lax.broadcasted_iota(jnp.int32, inner.shape, 1)
    inner = jnp.where(col < num_clusters, inner, NEG)     # mask padded clusters
    inner_ref[...] = inner

    # Cluster loss partial: -(one_hot(argmax) * inner).sum(-1) == -max_k inner,
    # summed over the valid rows of this tile.
    row = (pl.program_id(0) * tile_rows
           + jax.lax.broadcasted_iota(jnp.int32, (tile_rows, 1), 0))
    valid = (row < n_valid).astype(jnp.float32)           # (TM, 1)
    max_in = jnp.max(inner, axis=-1, keepdims=True)       # (TM, 1)
    s = jnp.sum(max_in * valid, axis=0, keepdims=True)    # (1, 1)
    _write_tile_scalar(closs_ref, s)


def ce_kernel(logits_ref, label_ref, num_ref, cnt_ref):
    # Masked cross-entropy partial sums over one row tile; label == -1 ignored.
    logits = logits_ref[...]                              # (TM, C) f32
    label = label_ref[...]                                # (TM, 1) i32
    m = logits - jnp.max(logits, axis=-1, keepdims=True)
    logp = m - jnp.log(jnp.sum(jnp.exp(m), axis=-1, keepdims=True))
    cls = jax.lax.broadcasted_iota(jnp.int32, logits.shape, 1)
    onehot = (cls == label).astype(jnp.float32)
    per = -jnp.sum(onehot * logp, axis=-1, keepdims=True)  # (TM, 1)
    valid = (label >= 0).astype(jnp.float32)               # (TM, 1)
    _write_tile_scalar(num_ref, jnp.sum(per * valid, axis=0, keepdims=True))
    _write_tile_scalar(cnt_ref, jnp.sum(valid, axis=0, keepdims=True))


# --------------------------- pallas_call wrappers ----------------------------

def fused_embed_mse(x_tok, a_tok, w, b, tile_rows):
    n_pad, p = x_tok.shape
    d = w.shape[1]
    nt = n_pad // tile_rows
    return pl.pallas_call(
        embed_mse_kernel,
        out_shape=(
            jax.ShapeDtypeStruct((n_pad, d), jnp.float32),       # code
            jax.ShapeDtypeStruct((n_pad, d), jnp.float32),       # other code
            jax.ShapeDtypeStruct((nt, 8, 128), jnp.float32),     # mse partials
        ),
        grid_spec=pltpu.PrefetchScalarGridSpec(
            num_scalar_prefetch=0,
            grid=(nt,),
            in_specs=[
                pl.BlockSpec((tile_rows, p), lambda i: (i, 0)),
                pl.BlockSpec((tile_rows, p), lambda i: (i, 0)),
                pl.BlockSpec((p, d), lambda i: (0, 0)),          # resident weight
                pl.BlockSpec((1, d), lambda i: (0, 0)),          # resident bias
            ],
            out_specs=(
                pl.BlockSpec((tile_rows, d), lambda i: (i, 0)),
                pl.BlockSpec((tile_rows, d), lambda i: (i, 0)),
                pl.BlockSpec((1, 8, 128), lambda i: (i, 0, 0)),
            ),
        ),
        compiler_params=_COMPILER_PARAMS,
    )(x_tok, a_tok, w, b)


def fused_probe(feat, w_lin, b_lin, clusters_t, *, num_clusters, n_valid, tile_rows):
    n_pad, d = feat.shape
    nt = n_pad // tile_rows
    kernel = functools.partial(
        probe_kernel, num_clusters=num_clusters, n_valid=n_valid, tile_rows=tile_rows)
    return pl.pallas_call(
        kernel,
        out_shape=(
            jax.ShapeDtypeStruct((n_pad, CLASS_PAD), jnp.float32),  # linear logits
            jax.ShapeDtypeStruct((n_pad, CLASS_PAD), jnp.float32),  # cluster inner
            jax.ShapeDtypeStruct((nt, 8, 128), jnp.float32),        # loss partials
        ),
        grid_spec=pltpu.PrefetchScalarGridSpec(
            num_scalar_prefetch=0,
            grid=(nt,),
            in_specs=[
                pl.BlockSpec((tile_rows, d), lambda i: (i, 0)),
                pl.BlockSpec((d, CLASS_PAD), lambda i: (0, 0)),     # resident
                pl.BlockSpec((1, CLASS_PAD), lambda i: (0, 0)),     # resident
                pl.BlockSpec((d, CLASS_PAD), lambda i: (0, 0)),     # resident
            ],
            out_specs=(
                pl.BlockSpec((tile_rows, CLASS_PAD), lambda i: (i, 0)),
                pl.BlockSpec((tile_rows, CLASS_PAD), lambda i: (i, 0)),
                pl.BlockSpec((1, 8, 128), lambda i: (i, 0, 0)),
            ),
        ),
        compiler_params=_COMPILER_PARAMS,
    )(feat, w_lin, b_lin, clusters_t)


def cross_entropy_partials(logits, label, tile_rows):
    n_pad, c = logits.shape
    nt = n_pad // tile_rows
    return pl.pallas_call(
        ce_kernel,
        out_shape=(
            jax.ShapeDtypeStruct((nt, 8, 128), jnp.float32),   # numerator partials
            jax.ShapeDtypeStruct((nt, 8, 128), jnp.float32),   # valid-count partials
        ),
        grid_spec=pltpu.PrefetchScalarGridSpec(
            num_scalar_prefetch=0,
            grid=(nt,),
            in_specs=[
                pl.BlockSpec((tile_rows, c), lambda i: (i, 0)),
                pl.BlockSpec((tile_rows, 1), lambda i: (i, 0)),
            ],
            out_specs=(
                pl.BlockSpec((1, 8, 128), lambda i: (i, 0, 0)),
                pl.BlockSpec((1, 8, 128), lambda i: (i, 0, 0)),
            ),
        ),
        compiler_params=_COMPILER_PARAMS,
    )(logits, label)


# --------------------------- JAX glue ----------------------------------------

def patchify(img):
    # img: (B, C, H, W) NCHW  ->  (B*Hf*Wf, C*PATCH*PATCH) token matrix
    b, c, h, w = img.shape
    hf, wf = h // PATCH, w // PATCH
    x = img.reshape(b, c, hf, PATCH, wf, PATCH)
    x = jnp.transpose(x, (0, 2, 4, 1, 3, 5))         # (B, Hf, Wf, C, ph, pw)
    return x.reshape(b * hf * wf, c * PATCH * PATCH), (b, hf, wf)


class EMAWrapperPallas:
    """Mirrors EMAWrapper.forward (eval mode) with Pallas kernels for compute."""

    def __init__(self, cfg, params):
        self.training = False
        self.num_classes = cfg["num_classes"]
        self.extra_classes = cfg["eval"]["extra_classes"]
        self.stego_weight = cfg["loss"]["stego_weight"]
        self.mse_weight = cfg["loss"]["mse_weight"]
        self.bank_weight = cfg["loss"]["info_nce_weight"]
        self.output_type = cfg["eval"]["output_type"]
        if self.output_type != "feat":
            raise ValueError(f"Unsupported output type {self.output_type}.")
        self.output_dim = cfg["model"]["hidden_dim"]

        C = self.num_classes
        K = self.num_classes + self.extra_classes
        D = self.output_dim
        assert C <= CLASS_PAD and K <= CLASS_PAD
        self.n_clusters = K

        # bf16 matmul operands (f32 accumulation inside the kernels).
        self.w_embed = params["w_embed"].astype(jnp.bfloat16)          # (P, D)
        self.b_embed = params["b_embed"].astype(jnp.float32).reshape(1, D)

        # Linear probe: zero-pad the class axis to 128 lanes (lane-dense output).
        w_lin = jnp.zeros((D, CLASS_PAD), jnp.float32).at[:, :C].set(
            params["w_lin"].astype(jnp.float32))
        b_lin = jnp.zeros((1, CLASS_PAD), jnp.float32).at[:, :C].set(
            params["b_lin"].astype(jnp.float32).reshape(1, C))
        self.w_lin = w_lin.astype(jnp.bfloat16)
        self.b_lin = b_lin

        # Cluster probe: L2-normalize once on the host, transpose to (D, K), pad.
        cl = params["clusters"].astype(jnp.float32)
        cl = cl * jax.lax.rsqrt(jnp.sum(cl * cl, axis=-1, keepdims=True) + 1e-12)
        cl_t = jnp.zeros((D, CLASS_PAD), jnp.float32).at[:, :K].set(cl.T)
        self.clusters_t = cl_t.astype(jnp.bfloat16)

    # stand-in for DINOUnSeg: fused patch-embed projection + MSE consistency loss
    def _model(self, img, aug_img):
        x_tok, grid = patchify(img)
        a_tok, _ = patchify(aug_img)
        n_tok = x_tok.shape[0]
        d = self.output_dim

        tm = _tile_rows(n_tok, TOKEN_TILE)
        n_pad = _round_up(n_tok, tm)
        x_tok = _pad_rows(x_tok.astype(jnp.bfloat16), n_pad)
        a_tok = _pad_rows(a_tok.astype(jnp.bfloat16), n_pad)

        code_pad, other_pad, mse_part = fused_embed_mse(
            x_tok, a_tok, self.w_embed, self.b_embed, tm)
        mse = mse_part[:, 0, 0].sum() / jnp.float32(n_tok * d)

        output = {
            "mse-loss": mse,
            "stego-loss": jnp.float32(0.0),   # TODO(synk): STEGO correspondence loss
            "info-nce": jnp.float32(0.0),     # TODO(synk): InfoNCE memory bank
        }
        return code_pad[:n_tok], other_pad[:n_tok], output, grid

    # stand-in for UnSegEvaluator (fused linear probe + cluster probe)
    def _evaluator(self, feat_tok, grid, label):
        b, hf, wf = grid
        B, H, W = label.shape
        C = self.num_classes
        K = self.n_clusters
        n_tok = feat_tok.shape[0]

        tm = _tile_rows(n_tok, TOKEN_TILE)
        n_pad = _round_up(n_tok, tm)
        feat_pad = _pad_rows(feat_tok, n_pad)

        logits_pad, inner_pad, closs_part = fused_probe(
            feat_pad, self.w_lin, self.b_lin, self.clusters_t,
            num_clusters=K, n_valid=n_tok, tile_rows=tm)

        # ---- linear probe: upsample logits, argmax preds, masked cross-entropy ----
        lin_lr = logits_pad[:n_tok, :C].reshape(b, hf, wf, C)
        lin_hr = jax.image.resize(lin_lr, (B, H, W, C), method="bilinear")
        linear_preds = jnp.argmax(lin_hr, axis=-1).astype(jnp.int32)    # (B, H, W)

        n_hr = B * H * W
        tce = _tile_rows(n_hr, CE_TILE)
        n_hr_pad = _round_up(n_hr, tce)
        logits_flat = _pad_rows(lin_hr.reshape(n_hr, C), n_hr_pad)
        label_flat = label.reshape(n_hr, 1).astype(jnp.int32)
        label_flat = _pad_rows(label_flat, n_hr_pad, value=-1)          # ignored rows
        num_part, cnt_part = cross_entropy_partials(logits_flat, label_flat, tce)
        linear_loss = num_part[:, 0, 0].sum() / jnp.maximum(cnt_part[:, 0, 0].sum(), 1.0)

        # ---- cluster probe: loss from per-tile partials, preds from inner ----
        cluster_loss = -(closs_part[:, 0, 0].sum()) / jnp.float32(n_tok)
        inner = inner_pad[:n_tok, :K]
        probs_lr = jax.nn.one_hot(jnp.argmax(inner, axis=-1), K, dtype=jnp.float32)
        probs_lr = probs_lr.reshape(b, hf, wf, K)
        probs_hr = jax.image.resize(probs_lr, (B, H, W, K), method="bilinear")
        cluster_preds = jnp.argmax(probs_hr, axis=-1).astype(jnp.int32)  # (B, H, W)

        return linear_loss, linear_preds, cluster_loss, cluster_preds

    def __call__(self, img, aug_img, label, img_pos=None, it=-1, is_crf=False):
        model_loss = jnp.zeros((1,), jnp.float32)
        code_tok, other_tok, output, grid = self._model(img, aug_img)

        if self.training and self.stego_weight > 0.0:
            model_loss = model_loss + output["stego-loss"] * self.stego_weight
        if self.mse_weight > 0.0:
            model_loss = model_loss + output["mse-loss"] * self.mse_weight
        if self.bank_weight > 0.0:
            model_loss = model_loss + output["info-nce"] * self.bank_weight
        output["loss"] = model_loss

        # output_type == 'feat' -> detached clone of code
        out_feat = jax.lax.stop_gradient(code_tok)

        linear_loss, linear_preds, cluster_loss, cluster_preds = self._evaluator(
            out_feat, grid, label
        )
        output["linear-loss"] = linear_loss
        output["cluster-loss"] = cluster_loss
        total_loss = model_loss + linear_loss + cluster_loss
        return total_loss, output, (linear_preds, cluster_preds)


# --------------------------- main --------------------------------------------

if __name__ == "__main__":
    cfg = {
        "num_classes": 4,
        "eval": {"extra_classes": 0, "output_type": "feat"},
        "loss": {"stego_weight": 0.0, "mse_weight": 1.0, "info_nce_weight": 0.0},
        "model": {"hidden_dim": 32},
    }

    B, Cin, H, W = 2, 3, 16, 16
    D = cfg["model"]["hidden_dim"]
    C = cfg["num_classes"]
    K = C + cfg["eval"]["extra_classes"]
    P = Cin * PATCH * PATCH

    key = jax.random.PRNGKey(0)
    k_img, k_aug, k_lab, k_w0, k_w1, k_w2 = jax.random.split(key, 6)

    img = jax.random.normal(k_img, (B, Cin, H, W), jnp.float32)
    aug_img = img + 0.05 * jax.random.normal(k_aug, (B, Cin, H, W), jnp.float32)
    label = jax.random.randint(k_lab, (B, H, W), 0, C).astype(jnp.int32)
    label = label.at[0, 0, 0].set(-1)  # exercise the ignore-index mask

    params = {
        "w_embed": 0.05 * jax.random.normal(k_w0, (P, D), jnp.float32),
        "b_embed": jnp.zeros((1, D), jnp.float32),
        "w_lin": 0.05 * jax.random.normal(k_w1, (D, C), jnp.float32),
        "b_lin": jnp.zeros((1, C), jnp.float32),
        "clusters": jax.random.normal(k_w2, (K, D), jnp.float32),
    }

    wrapper = EMAWrapperPallas(cfg, params)
    total_loss, output, (linear_preds, cluster_preds) = wrapper(img, aug_img, label)

    jax.block_until_ready(total_loss)
    jax.block_until_ready(linear_preds)
    jax.block_until_ready(cluster_preds)

    assert total_loss.shape == (1,)
    assert linear_preds.shape == (B, H, W)
    assert cluster_preds.shape == (B, H, W)
    assert bool(jnp.isfinite(total_loss).all())
    assert bool(jnp.isfinite(output["mse-loss"]))
    assert bool(jnp.isfinite(output["linear-loss"]))
    assert bool(jnp.isfinite(output["cluster-loss"]))

    print("KERNEL_OK")
</pallas_src>

<mosaic_0001>
module attributes {stable_mosaic.version = 11 : i64} {
  func.func @embed_mse_kernel(%arg0: i32, %arg1: memref<32x48xbf16, #tpu.memory_space<vmem>>, %arg2: memref<32x48xbf16, #tpu.memory_space<vmem>>, %arg3: memref<48x32xbf16, #tpu.memory_space<vmem>>, %arg4: memref<1x32xf32, #tpu.memory_space<vmem>>, %arg5: memref<32x32xf32, #tpu.memory_space<vmem>>, %arg6: memref<32x32xf32, #tpu.memory_space<vmem>>, %arg7: memref<1x8x128xf32, #tpu.memory_space<vmem>>) attributes {dimension_semantics = [#tpu.dimension_semantics<parallel>], iteration_bounds = array<i64: 1>, scalar_prefetch = 0 : i64, scratch_operands = 0 : i64, tpu.core_type = #tpu.core_type<tc>, window_params = [{transform_indices = @transform_0, window_bounds = array<i64: 32, 48>}, {transform_indices = @transform_1, window_bounds = array<i64: 32, 48>}, {pipeline_mode = #tpu.pipeline_mode<synchronous>, transform_indices = @transform_2, window_bounds = array<i64: 48, 32>}, {pipeline_mode = #tpu.pipeline_mode<synchronous>, transform_indices = @transform_3, window_bounds = array<i64: 1, 32>}, {transform_indices = @transform_4, window_bounds = array<i64: 32, 32>}, {transform_indices = @transform_5, window_bounds = array<i64: 32, 32>}, {transform_indices = @transform_6, window_bounds = array<i64: 1, 8, 128>}]} {
    %c0 = arith.constant 0 : index
    %c0_0 = arith.constant 0 : index
    %0 = vector.load %arg3[%c0, %c0_0] : memref<48x32xbf16, #tpu.memory_space<vmem>>, vector<48x32xbf16>
    %c0_1 = arith.constant 0 : index
    %c0_2 = arith.constant 0 : index
    %1 = vector.load %arg4[%c0_1, %c0_2] : memref<1x32xf32, #tpu.memory_space<vmem>>, vector<1x32xf32>
    %c0_3 = arith.constant 0 : index
    %c0_4 = arith.constant 0 : index
    %2 = vector.load %arg1[%c0_3, %c0_4] : memref<32x48xbf16, #tpu.memory_space<vmem>>, vector<32x48xbf16>
    %cst = arith.constant dense<0.000000e+00> : vector<32x32xf32>
    %3 = tpu.matmul %2, %0, %cst {dimension_numbers = #tpu.dot_dimension_numbers<[1], [0], [0], [1], [0, 0, 1, 1], [], []>} : vector<32x48xbf16>, vector<48x32xbf16>, vector<32x32xf32> -> vector<32x32xf32>
    %4 = vector.broadcast %1 : vector<1x32xf32> to vector<32x32xf32>
    %5 = arith.addf %3, %4 : vector<32x32xf32>
    %c0_5 = arith.constant 0 : index
    %c0_6 = arith.constant 0 : index
    %6 = vector.load %arg2[%c0_5, %c0_6] : memref<32x48xbf16, #tpu.memory_space<vmem>>, vector<32x48xbf16>
    %cst_7 = arith.constant dense<0.000000e+00> : vector<32x32xf32>
    %7 = tpu.matmul %6, %0, %cst_7 {dimension_numbers = #tpu.dot_dimension_numbers<[1], [0], [0], [1], [0, 0, 1, 1], [], []>} : vector<32x48xbf16>, vector<48x32xbf16>, vector<32x32xf32> -> vector<32x32xf32>
    %8 = vector.broadcast %1 : vector<1x32xf32> to vector<32x32xf32>
    %9 = arith.addf %7, %8 : vector<32x32xf32>
    %c0_8 = arith.constant 0 : index
    %c0_9 = arith.constant 0 : index
    %10 = vector.load %arg5[%c0_8, %c0_9] : memref<32x32xf32, #tpu.memory_space<vmem>>, vector<32x32xf32>
    tpu.vector_store %arg5[%c0_8, %c0_9], %5 {strides = array<i32>} : memref<32x32xf32, #tpu.memory_space<vmem>>, vector<32x32xf32>,
    %c0_10 = arith.constant 0 : index
    %c0_11 = arith.constant 0 : index
    %11 = vector.load %arg6[%c0_10, %c0_11] : memref<32x32xf32, #tpu.memory_space<vmem>>, vector<32x32xf32>
    tpu.vector_store %arg6[%c0_10, %c0_11], %9 {strides = array<i32>} : memref<32x32xf32, #tpu.memory_space<vmem>>, vector<32x32xf32>,
    %12 = arith.subf %5, %9 : vector<32x32xf32>
    %13 = arith.mulf %12, %12 : vector<32x32xf32>
    %cst_12 = arith.constant dense<0.000000e+00> : vector<32xf32>
    %14 = vector.multi_reduction <add>, %13, %cst_12 [1] : vector<32x32xf32> to vector<32xf32>
    %15 = vector.shape_cast %14 : vector<32xf32> to vector<32x1xf32>
    %cst_13 = arith.constant dense<0.000000e+00> : vector<1xf32>
    %16 = vector.multi_reduction <add>, %15, %cst_13 [0] : vector<32x1xf32> to vector<1xf32>
    %17 = vector.shape_cast %16 : vector<1xf32> to vector<1x1xf32>
    %18 = vector.shape_cast %17 : vector<1x1xf32> to vector<1x1x1xf32>
    %19 = vector.shape_cast %18 : vector<1x1x1xf32> to vector<1x1x1xf32>
    %20 = vector.broadcast %19 : vector<1x1x1xf32> to vector<1x8x128xf32>
    %c0_14 = arith.constant 0 : index
    %c0_15 = arith.constant 0 : index
    %c0_16 = arith.constant 0 : index
    %21 = vector.load %arg7[%c0_14, %c0_15, %c0_16] : memref<1x8x128xf32, #tpu.memory_space<vmem>>, vector<1x8x128xf32>
    tpu.vector_store %arg7[%c0_14, %c0_15, %c0_16], %20 {strides = array<i32>} : memref<1x8x128xf32, #tpu.memory_space<vmem>>, vector<1x8x128xf32>,
    return
  }
  func.func @transform_0(%arg0: i32) -> (i32, i32) {
    %c0_i32 = arith.constant 0 : i32
    %c0_i32_0 = arith.constant 0 : i32
    return %arg0, %c0_i32 : i32, i32
  }
  func.func @transform_1(%arg0: i32) -> (i32, i32) {
    %c0_i32 = arith.constant 0 : i32
    %c0_i32_0 = arith.constant 0 : i32
    return %arg0, %c0_i32 : i32, i32
  }
  func.func @transform_2(%arg0: i32) -> (i32, i32) {
    %c0_i32 = arith.constant 0 : i32
    %c0_i32_0 = arith.constant 0 : i32
    %c0_i32_1 = arith.constant 0 : i32
    return %c0_i32, %c0_i32_0 : i32, i32
  }
  func.func @transform_3(%arg0: i32) -> (i32, i32) {
    %c0_i32 = arith.constant 0 : i32
    %c0_i32_0 = arith.constant 0 : i32
    %c0_i32_1 = arith.constant 0 : i32
    return %c0_i32, %c0_i32_0 : i32, i32
  }
  func.func @transform_4(%arg0: i32) -> (i32, i32) {
    %c0_i32 = arith.constant 0 : i32
    %c0_i32_0 = arith.constant 0 : i32
    return %arg0, %c0_i32 : i32, i32
  }
  func.func @transform_5(%arg0: i32) -> (i32, i32) {
    %c0_i32 = arith.constant 0 : i32
    %c0_i32_0 = arith.constant 0 : i32
    return %arg0, %c0_i32 : i32, i32
  }
  func.func @transform_6(%arg0: i32) -> (i32, i32, i32) {
    %c0_i32 = arith.constant 0 : i32
    %c0_i32_0 = arith.constant 0 : i32
    %c0_i32_1 = arith.constant 0 : i32
    return %arg0, %c0_i32, %c0_i32_0 : i32, i32, i32
  }
}

</mosaic_0001>

<bundles_post_ra>
// kernel: tpu_custom_call.1
= control target key start
LH: loop header
LB: loop body
LE: loop exit
PB: predicated region body
PF: predicated region fallthrough
CT: control target
= control target key end

     0   :  { %12 = vsyncpa [#allocation3], 0  ;;  %vm68_vm0 = vcmask 392192   ;;  %s524_s0 = inlined_call_operand.vmem [shape: bf16[32,48], index: 0, kind: input, shape index: {}]   ;;  %s525_s1 = inlined_call_operand.vmem [shape: bf16[32,48], index: 1, kind: input, shape index: {}]   ;;  %s526_s2 = inlined_call_operand.vmem [shape: bf16[48,32], index: 2, kind: input, shape index: {}]   ;;  %s527_s3 = inlined_call_operand.vmem [shape: f32[1,32], index: 3, kind: input, shape index: {}]   ;;  %s528_s4 = inlined_call_operand.hbm [shape: f32[32,32], index: 4, kind: output, shape index: {0}]   ;;  %s529_s5 = inlined_call_operand.hbm [shape: f32[32,32], index: 5, kind: output, shape index: {1}]   ;;  %s530_s6 = inlined_call_operand.hbm [shape: f32[1,8,128], index: 6, kind: output, shape index: {2}]  }
   0x1   :  { %v324_v0 = vld [vmem:[%s526_s2] sm:$0xff]   ;;  %v325_v1 = vld [vmem:[%s526_s2 + $0x8] sm:$0xff]   ;;  %v326_v2 = vld [vmem:[%s526_s2 + $0x10] sm:$0xff]  }
   0x2   :  { %299 = vmatprep.subr.bf16.mxu0 %v324_v0  ;;  %309 = vmatprep.subr.bf16.mxu1 %v324_v0  ;;  %v327_v3 = vld [vmem:[%s524_s0] sm:$0xff]  }
   0x3   :  { %300 = vmatpush3.bf16.msra.mxu0 %v324_v0  ;;  %310 = vmatpush3.bf16.msra.mxu1 %v324_v0  ;;  %v328_v4 = vld [vmem:[%s525_s1] sm:$0xff]  }
   0x4   :  { %301 = vmatprep.subr.bf16.mxu0 %v325_v1  ;;  %311 = vmatprep.subr.bf16.mxu1 %v325_v1 }
   0x5   :  { %305 = vmatprep.mubr.msk.bf16.mxu0 %vm68_vm0, %v327_v3  ;;  %315 = vmatprep.mubr.msk.bf16.mxu1 %vm68_vm0, %v328_v4 }
   0x7   :  { %302 = vmatpush3.bf16.msra.mxu0 %v325_v1  ;;  %312 = vmatpush3.bf16.msra.mxu1 %v325_v1 }
   0x8   :  { %13 = vsyncpa [#allocation5], 0  ;;  %303 = vmatprep.subr.bf16.mxu0 %v326_v2  ;;  %313 = vmatprep.subr.bf16.mxu1 %v326_v2  ;;  %v329_v5 = vld [vmem:[%s524_s0 + $0x8] sm:$0xff]   ;;  %v277_v7 = vld [vmem:[%s527_s3] ss:$0 sm:$0xff]  ;;  %vm193_vm1 = vcmask 261120  }
   0x9   :  { %v330_v6 = vld [vmem:[%s525_s1 + $0x8] sm:$0xff]   ;;  %s401_s0 = smov [#allocation4]   ;;  %s402_s3 = smov [#allocation2]  }
   0xa   :  { %s249_s1 = sshll.u32 %s401_s0, 4  ;;  %s237_s12 = sshll.u32 %s402_s3, 4  ;;  %s250_s1 = int_to_ptr.vmem [resolvable:$true] %s249_s1  ;;  %s481_s12 = int_to_ptr.vmem [resolvable:$true] %s237_s12 }
   0xb   :  { %304 = vmatpush3.bf16.msra.mxu0 %v326_v2  ;;  %314 = vmatpush3.bf16.msra.mxu1 %v326_v2  ;;  %s331_s13 = scalar_lea.vmem %s250_s1, 512  ;;  %p336_p1 = scmp.lt.s32.totalorder %s250_s1, %s250_s1 }
   0xc   :  { %p332_p0 = scmp.ne.s32.totalorder %s250_s1, %s331_s13  ;;  %p337_p2 = scmp.lt.s32.totalorder %s331_s13, %s331_s13 }
   0xe   :  { %306 = vmatmul.mubr.msk.bf16.vlgmr.msra.gmra.mrb[0].mxu0 %vm68_vm0, %v329_v5  ;;  %316 = vmatmul.mubr.msk.bf16.vlgmr.msra.gmra.mrb[0].mxu1 %vm68_vm0, %v330_v6  ;;  %p338_p3 = por %p337_p2, %p336_p1 }
  0x10   :  { %p339_p4 = pnand %p338_p3, %p332_p0 }
  0xe1   :  { %v307_v8 = vpop.f32.mrb[0].mxu0  ;;  %v317_v9 = vpop.f32.mrb[0].mxu1 }
  0xe2   :  { %v118_v10 = vadd.f32 %v307_v8, %v277_v7  ;;  %v187_v11 = vadd.f32 %v317_v9, %v277_v7  ;;  %v109_v12 = vpop.f32.mrb[1].mxu0  ;;  %v178_v13 = vpop.f32.mrb[1].mxu1 }
  0xe3   :  { %v110_v14 = vadd.f32 %v277_v7, %v109_v12  ;;  %v179_v15 = vadd.f32 %v277_v7, %v178_v13  ;;  %v308_v16 = vpop.f32.mrb[2].mxu0  ;;  %v318_v17 = vpop.f32.mrb[2].mxu1 }
  0xe4   :  { %196 = vst.msk [vmem:[#allocation2 + $0x10] sm:$0xff] %vm193_vm1, %v118_v10  ;;  %200 = vst.msk [vmem:[#allocation4 + $0x10] sm:$0xff] %vm193_vm1, %v187_v11  ;;  %v121_v18 = vadd.f32 %v308_v16, %v277_v7  ;;  %v190_v19 = vadd.f32 %v318_v17, %v277_v7  ;;  %v112_v20 = vpop.f32.mrb[3].mxu0  ;;  %v181_v21 = vpop.f32.mrb[3].mxu1  ;;  %v204_v22 = vsub.f32 %v118_v10, %v187_v11 }
  0xe5   :  { %194 = vst.msk [vmem:[#allocation2] sm:$0xff] %vm193_vm1, %v110_v14  ;;  %198 = vst.msk [vmem:[#allocation4] sm:$0xff] %vm193_vm1, %v179_v15  ;;  %v113_v23 = vadd.f32 %v277_v7, %v112_v20  ;;  %v182_v24 = vadd.f32 %v277_v7, %v181_v21  ;;  %v202_v25 = vsub.f32 %v110_v14, %v179_v15 }
  0xe6   :  { %197 = vst.msk [vmem:[#allocation2 + $0x18] sm:$0xff] %vm193_vm1, %v121_v18  ;;  %201 = vst.msk [vmem:[#allocation4 + $0x18] sm:$0xff] %vm193_vm1, %v190_v19  ;;  %v205_v26 = vsub.f32 %v121_v18, %v190_v19  ;;  %v208_v27 = vmul.f32 %v204_v22, %v204_v22 }
  0xe7   :  { %195 = vst.msk [vmem:[#allocation2 + $0x8] sm:$0xff] %vm193_vm1, %v113_v23  ;;  %199 = vst.msk [vmem:[#allocation4 + $0x8] sm:$0xff] %vm193_vm1, %v182_v24  ;;  %v203_v28 = vsub.f32 %v113_v23, %v182_v24  ;;  %v206_v29 = vmul.f32 %v202_v25, %v202_v25 }
  0xe8   :  { %v216_v30 = vsel %vm193_vm1, %v208_v27, 0.0  ;;  %v209_v31 = vmul.f32 %v205_v26, %v205_v26 }
  0xe9   :  { %217 = vadd.xlane.f32.xlu1 %v216_v30  ;;  %v210_v32 = vsel %vm193_vm1, %v206_v29, 0.0  ;;  %v207_v33 = vmul.f32 %v203_v28, %v203_v28 }
  0xea   :  { %211 = vadd.xlane.f32.xlu0 %v210_v32  ;;  %v219_v34 = vsel %vm193_vm1, %v209_v31, 0.0 }
  0xeb   :  { %v213_v35 = vsel %vm193_vm1, %v207_v33, 0.0 }
  0xed   :  { %220 = vadd.xlane.f32.xlu1 %v219_v34 }
  0xee   :  { %214 = vadd.xlane.f32.xlu0 %v213_v35 }
  0xef   :  { %342 = shalt.err (!%p339_p4)
}
  0xf0   :  { %s343_s16 = scalar_lea.hbm %s529_s5, 512 }
  0xf1   :  { %p344_p5 = scmp.ne.s32.totalorder %s529_s5, %s343_s16  ;;  %p347_p6 = scmp.lt.u32.totalorder %s343_s16, %s529_s5 }
  0xf3   :  { %p349_p7 = pnand %p347_p6, %p344_p5 }
  0xf5   :  { %352 = shalt.err (!%p349_p7)
}
  0xf6   :  { %s403_s21 = smov 128   ;;  %s404_s22 = smov 8  }
  0xf7   :  { %255 = dma.vmem_to_hbm [thread:$0]  %s250_s1, 512, %s529_s5, [#allocation5], %s403_s21, %s403_s21, %s404_s22  }
  0xf8   :  { %s353_s25 = scalar_lea.vmem %s481_s12, 512  ;;  %p358_p9 = scmp.lt.s32.totalorder %s481_s12, %s481_s12 }
  0xf9   :  { %p354_p8 = scmp.ne.s32.totalorder %s481_s12, %s353_s25  ;;  %p359_p10 = scmp.lt.s32.totalorder %s353_s25, %s353_s25 }
  0xfb   :  { %p360_p11 = por %p359_p10, %p358_p9 }
  0xfd   :  { %p361_p12 = pnand %p360_p11, %p354_p8 }
  0xff   :  { %364 = shalt.err (!%p361_p12)
}
 0x100   :  { %s365_s28 = scalar_lea.hbm %s528_s4, 512 }
 0x101   :  { %p366_p13 = scmp.ne.s32.totalorder %s528_s4, %s365_s28  ;;  %p369_p0 = scmp.lt.u32.totalorder %s365_s28, %s528_s4 }
 0x103   :  { %p371_p1 = pnand %p369_p0, %p366_p13 }
 0x105   :  { %374 = shalt.err (!%p371_p1)
}
 0x106   :  { %243 = dma.vmem_to_hbm [thread:$0]  %s481_s12, 512, %s528_s4, [#allocation3], %s403_s21, %s403_s21, %s404_s22  }
 0x107   :  { %s405_s9 = smov [#allocation6]  }
 0x108   :  { %s262_s10 = sshll.u32 %s405_s9, 4  ;;  %s263_s10 = int_to_ptr.vmem [resolvable:$true] %s262_s10 }
 0x109   :  { %s375_s11 = scalar_lea.vmem %s263_s10, 128  ;;  %p380_p3 = scmp.lt.s32.totalorder %s263_s10, %s263_s10 }
 0x10a   :  { %p376_p2 = scmp.ne.s32.totalorder %s263_s10, %s375_s11  ;;  %p381_p4 = scmp.lt.s32.totalorder %s375_s11, %s375_s11 }
 0x10c   :  { %p382_p5 = por %p381_p4, %p380_p3 }
 0x10e   :  { %p383_p6 = pnand %p382_p5, %p376_p2 }
 0x176   :  { %v218_v37 = vpop.xlane.xlu1 %217 }
 0x177   :  { %v212_v36 = vpop.xlane.xlu0 %211 }
 0x17a   :  { %v221_v41 = vpop.xlane.xlu1 %220 }
 0x17b   :  { %v215_v38 = vpop.xlane.xlu0 %214 }
 0x17c   :  { %v222_v39 = vadd.f32 %v215_v38, %v212_v36 }
 0x17e   :  { %v223_v40 = vadd.f32 %v222_v39, %v218_v37 }
 0x180   :  { %v224_v42 = vadd.f32 %v223_v40, %v221_v41 }
 0x182   :  { %v225_v43 = vrot.slane %v224_v42, 4 }
 0x184   :  { %v226_v44 = vadd.f32 %v225_v43, %v224_v42 }
 0x186   :  { %v227_v45 = vrot.slane %v226_v44, 2 }
 0x188   :  { %v228_v46 = vadd.f32 %v227_v45, %v226_v44 }
 0x18a   :  { %v229_v47 = vrot.slane %v228_v46, 1 }
 0x18c   :  { %v230_v48 = vadd.f32 %v229_v47, %v228_v46 }
 0x18e   :  { %231 = vst [vmem:[#allocation6] sm:$0xff] %v230_v48 }
 0x18f   :  { %386 = shalt.err (!%p383_p6)
}
 0x190   :  { %s387_s1 = scalar_lea.hbm %s530_s6, 128 }
 0x191   :  { %p388_p7 = scmp.ne.s32.totalorder %s530_s6, %s387_s1  ;;  %p391_p8 = scmp.lt.u32.totalorder %s387_s1, %s530_s6 }
 0x193   :  { %p393_p9 = pnand %p391_p8, %p388_p7 }
 0x195   :  { %396 = shalt.err (!%p393_p9)
}
 0x196   :  { %265 = dma.vmem_to_hbm [thread:$0]  %s263_s10, 128, %s530_s6, [#allocation5]  }
 0x197   :  { %397 = dma.done.wait [#allocation3], 512  }
 0x198   :  { %398 = vsyncadd [#allocation3], 4294966784 }
 0x199   :  { %399 = dma.done.wait [#allocation5], 640  }
 0x19a   :  { %400 = vsyncadd [#allocation5], 4294966656 }
 0x19b   :  { %275 = vsyncpa [#allocation3], 1 }
 0x19c   :  { %276 = vsyncpa [#allocation5], 1 }

</bundles_post_ra>
